<compile_context>
chip_gen: v7x
topology: tpu7x:2x2x1
jax: 0.10.0
libtpu: 0.0.40
codegen_flags: <defaults>
</compile_context>

<pallas_src>
import functools
import math

import jax
import jax.numpy as jnp
from jax.experimental import pallas as pl
from jax.experimental.pallas import tpu as pltpu

LANES = 128


def _sublane_align(dtype):
    # Minimum second-minor tile for the dtype's packed layout.
    return {4: 8, 2: 16, 1: 32}.get(jnp.dtype(dtype).itemsize, 8)


def _lif_kernel(ir_ref, o_ref, u_ref, *, tau_m, u_rest, u_th,
                t_blk, chunk_r, unroll):
    # ir_ref / o_ref : (t_blk, tile_r, LANES) blocks (input dtype)
    # u_ref          : (tile_r, LANES) f32 persistent membrane-potential carry
    tb = pl.program_id(1)  # time-block index (inner, "arbitrary")

    @pl.when(tb == 0)
    def _():
        u_ref[...] = jnp.full(u_ref.shape, u_rest, dtype=u_ref.dtype)

    inv_tau = 1.0 / tau_m  # PyTorch computes `1 / self.tau_m * (h + ir_t)`
    tile_r = u_ref.shape[0]
    n_chunks = tile_r // chunk_r

    def process_chunk(rows):
        # Run all t_blk steps for this row chunk with u carried in values:
        # one u_ref load and one u_ref store per chunk.
        def tstep(i, u):
            ir_t = ir_ref[i, rows, :].astype(jnp.float32)
            h = u_rest - u                       # == -(u - u_rest) bit-exact
            du = inv_tau * (h + ir_t)
            u_t = du + u
            spike = u_t >= u_th                  # == (u_t - u_th) >= 0
            o_ref[i, rows, :] = spike.astype(o_ref.dtype)
            # Reset: identical to u_t*(1-o) + u_rest*o for o in {0, 1}.
            return jnp.where(spike, jnp.float32(u_rest), u_t)

        u_ref[rows, :] = jax.lax.fori_loop(0, t_blk, tstep, u_ref[rows, :],
                                           unroll=unroll)

    if n_chunks == 1:
        process_chunk(slice(None))
    else:
        def chunk_body(c, carry):
            r0 = pl.multiple_of(c * chunk_r, chunk_r)
            process_chunk(pl.ds(r0, chunk_r))
            return carry
        jax.lax.fori_loop(0, n_chunks, chunk_body, 0)


def lif_forward(ir, *, tau_m, u_rest, u_th,
                max_tile_r=1024, target_block_bytes=4 << 20, max_t_blk=64):
    """ir: (T, B, C, H, W). Returns spikes, same shape/dtype."""
    orig_shape = ir.shape
    orig_dtype = ir.dtype
    T = orig_shape[0]
    N = math.prod(orig_shape[1:])
    itemsize = jnp.dtype(orig_dtype).itemsize
    align = _sublane_align(orig_dtype)

    # ---- lane remainder pad only (no R/T padding; Pallas masks edge blocks)
    R = pl.cdiv(N, LANES)
    pad_n = R * LANES - N
    ir_flat = ir.reshape(T, N)
    if pad_n:
        ir_flat = jnp.pad(ir_flat, ((0, 0), (0, pad_n)))
    ir3 = ir_flat.reshape(T, R, LANES)

    # ---- r-tiling: bounded tile size, >= 2 tiles when possible (v7x megacore)
    n_r_tiles = pl.cdiv(R, max_tile_r)
    if n_r_tiles < 2 and R > align:
        n_r_tiles = 2
    tile_r = pl.cdiv(R, n_r_tiles)
    chunk_r = 64 if tile_r >= 64 else align       # in-kernel row chunk
    tile_r = pl.cdiv(tile_r, chunk_r) * chunk_r   # multiple of chunk & align
    n_r_tiles = pl.cdiv(R, tile_r)

    # ---- time blocking: ~4 MiB DMA blocks; prefer t_blk dividing T so the
    #      last block is not ragged (ragged is still correct, just wasted work)
    per_step_bytes = tile_r * LANES * itemsize
    cap = int(max(1, min(T, max_t_blk, target_block_bytes // per_step_bytes)))
    t_blk = 1
    for d in range(cap, 0, -1):
        if T % d == 0:
            t_blk = d
            break
    if t_blk < max(1, cap // 2):
        t_blk = cap                               # accept a ragged last block
    n_t_blocks = pl.cdiv(T, t_blk)

    # ---- explicit VMEM budget: 2 specs x 2 buffers x block + f32 scratch
    block_bytes = t_blk * tile_r * LANES * itemsize
    scratch_bytes = tile_r * LANES * 4
    vmem_limit = int(min(64 << 20,
                         4 * block_bytes + scratch_bytes + (8 << 20)))

    kernel = functools.partial(
        _lif_kernel, tau_m=float(tau_m), u_rest=float(u_rest),
        u_th=float(u_th), t_blk=t_blk, chunk_r=chunk_r,
        unroll=int(max(1, min(t_blk, 8))))

    cost = pl.CostEstimate(flops=5 * T * N, transcendentals=0,
                           bytes_accessed=2 * T * N * itemsize)

    out = pl.pallas_call(
        kernel,
        out_shape=jax.ShapeDtypeStruct((T, R, LANES), orig_dtype),
        grid_spec=pltpu.PrefetchScalarGridSpec(
            num_scalar_prefetch=0,
            grid=(n_r_tiles, n_t_blocks),
            in_specs=[pl.BlockSpec((t_blk, tile_r, LANES),
                                   lambda r, t: (t, r, 0))],
            out_specs=pl.BlockSpec((t_blk, tile_r, LANES),
                                   lambda r, t: (t, r, 0)),
            scratch_shapes=[pltpu.VMEM((tile_r, LANES), jnp.float32)],
        ),
        compiler_params=pltpu.CompilerParams(
            dimension_semantics=("parallel", "arbitrary"),
            vmem_limit_bytes=vmem_limit,
        ),
        cost_estimate=cost,
    )(ir3)

    out = out.reshape(T, R * LANES)
    if pad_n:
        out = out[:, :N]
    return out.reshape(orig_shape)


def lif_reference(ir, *, tau_m, u_rest, u_th):
    """Pure-JAX reference mirroring the PyTorch forward loop op-for-op."""
    inv_tau = 1.0 / tau_m

    def step(u_t_1, ir_t):
        h = -(u_t_1 - u_rest)
        du = inv_tau * (h + ir_t)
        u_t = du + u_t_1
        o_t = (u_t - u_th >= 0.0).astype(ir_t.dtype)
        u_next = u_t * (1.0 - o_t) + u_rest * o_t
        return u_next, o_t

    u0 = jnp.full_like(ir[0], u_rest)
    _, o_seq = jax.lax.scan(step, u0, ir)
    return o_seq


if __name__ == "__main__":
    # LIF hyperparameters (deterministic, in-script).
    tau_m = 2.0
    u_rest = 0.0
    u_th = 0.5

    # Small shapes: T=8 time steps, batch=2, channels=4, spatial=16x16 (NCHW).
    T, B, C, H, W = 8, 2, 4, 16, 16
    key = jax.random.PRNGKey(0)
    ir = jax.random.normal(key, (T, B, C, H, W), dtype=jnp.float32)

    out = jax.block_until_ready(
        lif_forward(ir, tau_m=tau_m, u_rest=u_rest, u_th=u_th))
    ref = jax.block_until_ready(
        lif_reference(ir, tau_m=tau_m, u_rest=u_rest, u_th=u_th))

    assert out.shape == ir.shape and out.dtype == ir.dtype
    assert jnp.allclose(out, ref, atol=1e-6), "mismatch vs reference"

    print("KERNEL_OK")
</pallas_src>

<mosaic_0001>
module attributes {stable_mosaic.version = 11 : i64} {
  func.func @_lif_kernel(%arg0: i32, %arg1: i32, %arg2: memref<8x8x128xf32, #tpu.memory_space<vmem>>, %arg3: memref<8x8x128xf32, #tpu.memory_space<vmem>>, %arg4: memref<8x128xf32, #tpu.memory_space<vmem>>) attributes {dimension_semantics = [#tpu.dimension_semantics<parallel>, #tpu.dimension_semantics<arbitrary>], iteration_bounds = array<i64: 2, 1>, scalar_prefetch = 0 : i64, scratch_operands = 1 : i64, tpu.core_type = #tpu.core_type<tc>, window_params = [{transform_indices = @transform_0, window_bounds = array<i64: 8, 8, 128>}, {transform_indices = @transform_1, window_bounds = array<i64: 8, 8, 128>}]} {
    %c0_i32 = arith.constant 0 : i32
    %0 = arith.cmpi eq, %arg1, %c0_i32 : i32
    %1 = arith.extui %0 : i1 to i32
    %c0_i32_0 = arith.constant 0 : i32
    %2 = arith.cmpi ne, %1, %c0_i32_0 : i32
    scf.if %2 {
      %cst_68 = arith.constant 0.000000e+00 : f32
      %157 = vector.broadcast %cst_68 : f32 to vector<8x128xf32>
      %c0_69 = arith.constant 0 : index
      %c0_70 = arith.constant 0 : index
      %158 = vector.load %arg4[%c0_69, %c0_70] : memref<8x128xf32, #tpu.memory_space<vmem>>, vector<8x128xf32>
      tpu.vector_store %arg4[%c0_69, %c0_70], %157 {strides = array<i32>} : memref<8x128xf32, #tpu.memory_space<vmem>>, vector<8x128xf32>,
    } else {
    }
    %c0 = arith.constant 0 : index
    %c0_1 = arith.constant 0 : index
    %3 = vector.load %arg4[%c0, %c0_1] : memref<8x128xf32, #tpu.memory_space<vmem>>, vector<8x128xf32>
    %c0_i32_2 = arith.constant 0 : i32
    %4 = arith.index_cast %c0_i32_2 : i32 to index
    %c0_3 = arith.constant 0 : index
    %c0_4 = arith.constant 0 : index
    %5 = vector.load %arg2[%4, %c0_3, %c0_4] : memref<8x8x128xf32, #tpu.memory_space<vmem>>, vector<1x8x128xf32>
    %6 = vector.shape_cast %5 : vector<1x8x128xf32> to vector<8x128xf32>
    %cst = arith.constant 0.000000e+00 : f32
    %7 = vector.broadcast %cst : f32 to vector<8x128xf32>
    %8 = arith.subf %7, %3 : vector<8x128xf32>
    %9 = arith.addf %8, %6 : vector<8x128xf32>
    %cst_5 = arith.constant 5.000000e-01 : f32
    %10 = vector.broadcast %cst_5 : f32 to vector<8x128xf32>
    %11 = arith.mulf %10, %9 : vector<8x128xf32>
    %12 = arith.addf %11, %3 : vector<8x128xf32>
    %cst_6 = arith.constant 5.000000e-01 : f32
    %13 = vector.broadcast %cst_6 : f32 to vector<8x128xf32>
    %14 = arith.cmpf oge, %12, %13 : vector<8x128xf32>
    %15 = arith.extui %14 : vector<8x128xi1> to vector<8x128xi32>
    %16 = arith.sitofp %15 : vector<8x128xi32> to vector<8x128xf32>
    %17 = arith.index_cast %c0_i32_2 : i32 to index
    %c0_7 = arith.constant 0 : index
    %c0_8 = arith.constant 0 : index
    %18 = vector.load %arg3[%17, %c0_7, %c0_8] : memref<8x8x128xf32, #tpu.memory_space<vmem>>, vector<1x8x128xf32>
    %19 = vector.shape_cast %18 : vector<1x8x128xf32> to vector<8x128xf32>
    %20 = vector.shape_cast %16 : vector<8x128xf32> to vector<1x8x128xf32>
    tpu.vector_store %arg3[%17, %c0_7, %c0_8], %20 {strides = array<i32>} : memref<8x8x128xf32, #tpu.memory_space<vmem>>, vector<1x8x128xf32>,
    %cst_9 = arith.constant 0.000000e+00 : f32
    %21 = vector.broadcast %cst_9 : f32 to vector<8x128xf32>
    %22 = arith.select %14, %21, %12 : vector<8x128xi1>, vector<8x128xf32>
    %c1_i32 = arith.constant 1 : i32
    %23 = arith.index_cast %c1_i32 : i32 to index
    %c0_10 = arith.constant 0 : index
    %c0_11 = arith.constant 0 : index
    %24 = vector.load %arg2[%23, %c0_10, %c0_11] : memref<8x8x128xf32, #tpu.memory_space<vmem>>, vector<1x8x128xf32>
    %25 = vector.shape_cast %24 : vector<1x8x128xf32> to vector<8x128xf32>
    %cst_12 = arith.constant 0.000000e+00 : f32
    %26 = vector.broadcast %cst_12 : f32 to vector<8x128xf32>
    %27 = arith.subf %26, %22 : vector<8x128xf32>
    %28 = arith.addf %27, %25 : vector<8x128xf32>
    %cst_13 = arith.constant 5.000000e-01 : f32
    %29 = vector.broadcast %cst_13 : f32 to vector<8x128xf32>
    %30 = arith.mulf %29, %28 : vector<8x128xf32>
    %31 = arith.addf %30, %22 : vector<8x128xf32>
    %cst_14 = arith.constant 5.000000e-01 : f32
    %32 = vector.broadcast %cst_14 : f32 to vector<8x128xf32>
    %33 = arith.cmpf oge, %31, %32 : vector<8x128xf32>
    %34 = arith.extui %33 : vector<8x128xi1> to vector<8x128xi32>
    %35 = arith.sitofp %34 : vector<8x128xi32> to vector<8x128xf32>
    %36 = arith.index_cast %c1_i32 : i32 to index
    %c0_15 = arith.constant 0 : index
    %c0_16 = arith.constant 0 : index
    %37 = vector.load %arg3[%36, %c0_15, %c0_16] : memref<8x8x128xf32, #tpu.memory_space<vmem>>, vector<1x8x128xf32>
    %38 = vector.shape_cast %37 : vector<1x8x128xf32> to vector<8x128xf32>
    %39 = vector.shape_cast %35 : vector<8x128xf32> to vector<1x8x128xf32>
    tpu.vector_store %arg3[%36, %c0_15, %c0_16], %39 {strides = array<i32>} : memref<8x8x128xf32, #tpu.memory_space<vmem>>, vector<1x8x128xf32>,
    %cst_17 = arith.constant 0.000000e+00 : f32
    %40 = vector.broadcast %cst_17 : f32 to vector<8x128xf32>
    %41 = arith.select %33, %40, %31 : vector<8x128xi1>, vector<8x128xf32>
    %c2_i32 = arith.constant 2 : i32
    %42 = arith.index_cast %c2_i32 : i32 to index
    %c0_18 = arith.constant 0 : index
    %c0_19 = arith.constant 0 : index
    %43 = vector.load %arg2[%42, %c0_18, %c0_19] : memref<8x8x128xf32, #tpu.memory_space<vmem>>, vector<1x8x128xf32>
    %44 = vector.shape_cast %43 : vector<1x8x128xf32> to vector<8x128xf32>
    %cst_20 = arith.constant 0.000000e+00 : f32
    %45 = vector.broadcast %cst_20 : f32 to vector<8x128xf32>
    %46 = arith.subf %45, %41 : vector<8x128xf32>
    %47 = arith.addf %46, %44 : vector<8x128xf32>
    %cst_21 = arith.constant 5.000000e-01 : f32
    %48 = vector.broadcast %cst_21 : f32 to vector<8x128xf32>
    %49 = arith.mulf %48, %47 : vector<8x128xf32>
    %50 = arith.addf %49, %41 : vector<8x128xf32>
    %cst_22 = arith.constant 5.000000e-01 : f32
    %51 = vector.broadcast %cst_22 : f32 to vector<8x128xf32>
    %52 = arith.cmpf oge, %50, %51 : vector<8x128xf32>
    %53 = arith.extui %52 : vector<8x128xi1> to vector<8x128xi32>
    %54 = arith.sitofp %53 : vector<8x128xi32> to vector<8x128xf32>
    %55 = arith.index_cast %c2_i32 : i32 to index
    %c0_23 = arith.constant 0 : index
    %c0_24 = arith.constant 0 : index
    %56 = vector.load %arg3[%55, %c0_23, %c0_24] : memref<8x8x128xf32, #tpu.memory_space<vmem>>, vector<1x8x128xf32>
    %57 = vector.shape_cast %56 : vector<1x8x128xf32> to vector<8x128xf32>
    %58 = vector.shape_cast %54 : vector<8x128xf32> to vector<1x8x128xf32>
    tpu.vector_store %arg3[%55, %c0_23, %c0_24], %58 {strides = array<i32>} : memref<8x8x128xf32, #tpu.memory_space<vmem>>, vector<1x8x128xf32>,
    %cst_25 = arith.constant 0.000000e+00 : f32
    %59 = vector.broadcast %cst_25 : f32 to vector<8x128xf32>
    %60 = arith.select %52, %59, %50 : vector<8x128xi1>, vector<8x128xf32>
    %c3_i32 = arith.constant 3 : i32
    %61 = arith.index_cast %c3_i32 : i32 to index
    %c0_26 = arith.constant 0 : index
    %c0_27 = arith.constant 0 : index
    %62 = vector.load %arg2[%61, %c0_26, %c0_27] : memref<8x8x128xf32, #tpu.memory_space<vmem>>, vector<1x8x128xf32>
    %63 = vector.shape_cast %62 : vector<1x8x128xf32> to vector<8x128xf32>
    %cst_28 = arith.constant 0.000000e+00 : f32
    %64 = vector.broadcast %cst_28 : f32 to vector<8x128xf32>
    %65 = arith.subf %64, %60 : vector<8x128xf32>
    %66 = arith.addf %65, %63 : vector<8x128xf32>
    %cst_29 = arith.constant 5.000000e-01 : f32
    %67 = vector.broadcast %cst_29 : f32 to vector<8x128xf32>
    %68 = arith.mulf %67, %66 : vector<8x128xf32>
    %69 = arith.addf %68, %60 : vector<8x128xf32>
    %cst_30 = arith.constant 5.000000e-01 : f32
    %70 = vector.broadcast %cst_30 : f32 to vector<8x128xf32>
    %71 = arith.cmpf oge, %69, %70 : vector<8x128xf32>
    %72 = arith.extui %71 : vector<8x128xi1> to vector<8x128xi32>
    %73 = arith.sitofp %72 : vector<8x128xi32> to vector<8x128xf32>
    %74 = arith.index_cast %c3_i32 : i32 to index
    %c0_31 = arith.constant 0 : index
    %c0_32 = arith.constant 0 : index
    %75 = vector.load %arg3[%74, %c0_31, %c0_32] : memref<8x8x128xf32, #tpu.memory_space<vmem>>, vector<1x8x128xf32>
    %76 = vector.shape_cast %75 : vector<1x8x128xf32> to vector<8x128xf32>
    %77 = vector.shape_cast %73 : vector<8x128xf32> to vector<1x8x128xf32>
    tpu.vector_store %arg3[%74, %c0_31, %c0_32], %77 {strides = array<i32>} : memref<8x8x128xf32, #tpu.memory_space<vmem>>, vector<1x8x128xf32>,
    %cst_33 = arith.constant 0.000000e+00 : f32
    %78 = vector.broadcast %cst_33 : f32 to vector<8x128xf32>
    %79 = arith.select %71, %78, %69 : vector<8x128xi1>, vector<8x128xf32>
    %c4_i32 = arith.constant 4 : i32
    %80 = arith.index_cast %c4_i32 : i32 to index
    %c0_34 = arith.constant 0 : index
    %c0_35 = arith.constant 0 : index
    %81 = vector.load %arg2[%80, %c0_34, %c0_35] : memref<8x8x128xf32, #tpu.memory_space<vmem>>, vector<1x8x128xf32>
    %82 = vector.shape_cast %81 : vector<1x8x128xf32> to vector<8x128xf32>
    %cst_36 = arith.constant 0.000000e+00 : f32
    %83 = vector.broadcast %cst_36 : f32 to vector<8x128xf32>
    %84 = arith.subf %83, %79 : vector<8x128xf32>
    %85 = arith.addf %84, %82 : vector<8x128xf32>
    %cst_37 = arith.constant 5.000000e-01 : f32
    %86 = vector.broadcast %cst_37 : f32 to vector<8x128xf32>
    %87 = arith.mulf %86, %85 : vector<8x128xf32>
    %88 = arith.addf %87, %79 : vector<8x128xf32>
    %cst_38 = arith.constant 5.000000e-01 : f32
    %89 = vector.broadcast %cst_38 : f32 to vector<8x128xf32>
    %90 = arith.cmpf oge, %88, %89 : vector<8x128xf32>
    %91 = arith.extui %90 : vector<8x128xi1> to vector<8x128xi32>
    %92 = arith.sitofp %91 : vector<8x128xi32> to vector<8x128xf32>
    %93 = arith.index_cast %c4_i32 : i32 to index
    %c0_39 = arith.constant 0 : index
    %c0_40 = arith.constant 0 : index
    %94 = vector.load %arg3[%93, %c0_39, %c0_40] : memref<8x8x128xf32, #tpu.memory_space<vmem>>, vector<1x8x128xf32>
    %95 = vector.shape_cast %94 : vector<1x8x128xf32> to vector<8x128xf32>
    %96 = vector.shape_cast %92 : vector<8x128xf32> to vector<1x8x128xf32>
    tpu.vector_store %arg3[%93, %c0_39, %c0_40], %96 {strides = array<i32>} : memref<8x8x128xf32, #tpu.memory_space<vmem>>, vector<1x8x128xf32>,
    %cst_41 = arith.constant 0.000000e+00 : f32
    %97 = vector.broadcast %cst_41 : f32 to vector<8x128xf32>
    %98 = arith.select %90, %97, %88 : vector<8x128xi1>, vector<8x128xf32>
    %c5_i32 = arith.constant 5 : i32
    %99 = arith.index_cast %c5_i32 : i32 to index
    %c0_42 = arith.constant 0 : index
    %c0_43 = arith.constant 0 : index
    %100 = vector.load %arg2[%99, %c0_42, %c0_43] : memref<8x8x128xf32, #tpu.memory_space<vmem>>, vector<1x8x128xf32>
    %101 = vector.shape_cast %100 : vector<1x8x128xf32> to vector<8x128xf32>
    %cst_44 = arith.constant 0.000000e+00 : f32
    %102 = vector.broadcast %cst_44 : f32 to vector<8x128xf32>
    %103 = arith.subf %102, %98 : vector<8x128xf32>
    %104 = arith.addf %103, %101 : vector<8x128xf32>
    %cst_45 = arith.constant 5.000000e-01 : f32
    %105 = vector.broadcast %cst_45 : f32 to vector<8x128xf32>
    %106 = arith.mulf %105, %104 : vector<8x128xf32>
    %107 = arith.addf %106, %98 : vector<8x128xf32>
    %cst_46 = arith.constant 5.000000e-01 : f32
    %108 = vector.broadcast %cst_46 : f32 to vector<8x128xf32>
    %109 = arith.cmpf oge, %107, %108 : vector<8x128xf32>
    %110 = arith.extui %109 : vector<8x128xi1> to vector<8x128xi32>
    %111 = arith.sitofp %110 : vector<8x128xi32> to vector<8x128xf32>
    %112 = arith.index_cast %c5_i32 : i32 to index
    %c0_47 = arith.constant 0 : index
    %c0_48 = arith.constant 0 : index
    %113 = vector.load %arg3[%112, %c0_47, %c0_48] : memref<8x8x128xf32, #tpu.memory_space<vmem>>, vector<1x8x128xf32>
    %114 = vector.shape_cast %113 : vector<1x8x128xf32> to vector<8x128xf32>
    %115 = vector.shape_cast %111 : vector<8x128xf32> to vector<1x8x128xf32>
    tpu.vector_store %arg3[%112, %c0_47, %c0_48], %115 {strides = array<i32>} : memref<8x8x128xf32, #tpu.memory_space<vmem>>, vector<1x8x128xf32>,
    %cst_49 = arith.constant 0.000000e+00 : f32
    %116 = vector.broadcast %cst_49 : f32 to vector<8x128xf32>
    %117 = arith.select %109, %116, %107 : vector<8x128xi1>, vector<8x128xf32>
    %c6_i32 = arith.constant 6 : i32
    %118 = arith.index_cast %c6_i32 : i32 to index
    %c0_50 = arith.constant 0 : index
    %c0_51 = arith.constant 0 : index
    %119 = vector.load %arg2[%118, %c0_50, %c0_51] : memref<8x8x128xf32, #tpu.memory_space<vmem>>, vector<1x8x128xf32>
    %120 = vector.shape_cast %119 : vector<1x8x128xf32> to vector<8x128xf32>
    %cst_52 = arith.constant 0.000000e+00 : f32
    %121 = vector.broadcast %cst_52 : f32 to vector<8x128xf32>
    %122 = arith.subf %121, %117 : vector<8x128xf32>
    %123 = arith.addf %122, %120 : vector<8x128xf32>
    %cst_53 = arith.constant 5.000000e-01 : f32
    %124 = vector.broadcast %cst_53 : f32 to vector<8x128xf32>
    %125 = arith.mulf %124, %123 : vector<8x128xf32>
    %126 = arith.addf %125, %117 : vector<8x128xf32>
    %cst_54 = arith.constant 5.000000e-01 : f32
    %127 = vector.broadcast %cst_54 : f32 to vector<8x128xf32>
    %128 = arith.cmpf oge, %126, %127 : vector<8x128xf32>
    %129 = arith.extui %128 : vector<8x128xi1> to vector<8x128xi32>
    %130 = arith.sitofp %129 : vector<8x128xi32> to vector<8x128xf32>
    %131 = arith.index_cast %c6_i32 : i32 to index
    %c0_55 = arith.constant 0 : index
    %c0_56 = arith.constant 0 : index
    %132 = vector.load %arg3[%131, %c0_55, %c0_56] : memref<8x8x128xf32, #tpu.memory_space<vmem>>, vector<1x8x128xf32>
    %133 = vector.shape_cast %132 : vector<1x8x128xf32> to vector<8x128xf32>
    %134 = vector.shape_cast %130 : vector<8x128xf32> to vector<1x8x128xf32>
    tpu.vector_store %arg3[%131, %c0_55, %c0_56], %134 {strides = array<i32>} : memref<8x8x128xf32, #tpu.memory_space<vmem>>, vector<1x8x128xf32>,
    %cst_57 = arith.constant 0.000000e+00 : f32
    %135 = vector.broadcast %cst_57 : f32 to vector<8x128xf32>
    %136 = arith.select %128, %135, %126 : vector<8x128xi1>, vector<8x128xf32>
    %c7_i32 = arith.constant 7 : i32
    %137 = arith.index_cast %c7_i32 : i32 to index
    %c0_58 = arith.constant 0 : index
    %c0_59 = arith.constant 0 : index
    %138 = vector.load %arg2[%137, %c0_58, %c0_59] : memref<8x8x128xf32, #tpu.memory_space<vmem>>, vector<1x8x128xf32>
    %139 = vector.shape_cast %138 : vector<1x8x128xf32> to vector<8x128xf32>
    %cst_60 = arith.constant 0.000000e+00 : f32
    %140 = vector.broadcast %cst_60 : f32 to vector<8x128xf32>
    %141 = arith.subf %140, %136 : vector<8x128xf32>
    %142 = arith.addf %141, %139 : vector<8x128xf32>
    %cst_61 = arith.constant 5.000000e-01 : f32
    %143 = vector.broadcast %cst_61 : f32 to vector<8x128xf32>
    %144 = arith.mulf %143, %142 : vector<8x128xf32>
    %145 = arith.addf %144, %136 : vector<8x128xf32>
    %cst_62 = arith.constant 5.000000e-01 : f32
    %146 = vector.broadcast %cst_62 : f32 to vector<8x128xf32>
    %147 = arith.cmpf oge, %145, %146 : vector<8x128xf32>
    %148 = arith.extui %147 : vector<8x128xi1> to vector<8x128xi32>
    %149 = arith.sitofp %148 : vector<8x128xi32> to vector<8x128xf32>
    %150 = arith.index_cast %c7_i32 : i32 to index
    %c0_63 = arith.constant 0 : index
    %c0_64 = arith.constant 0 : index
    %151 = vector.load %arg3[%150, %c0_63, %c0_64] : memref<8x8x128xf32, #tpu.memory_space<vmem>>, vector<1x8x128xf32>
    %152 = vector.shape_cast %151 : vector<1x8x128xf32> to vector<8x128xf32>
    %153 = vector.shape_cast %149 : vector<8x128xf32> to vector<1x8x128xf32>
    tpu.vector_store %arg3[%150, %c0_63, %c0_64], %153 {strides = array<i32>} : memref<8x8x128xf32, #tpu.memory_space<vmem>>, vector<1x8x128xf32>,
    %cst_65 = arith.constant 0.000000e+00 : f32
    %154 = vector.broadcast %cst_65 : f32 to vector<8x128xf32>
    %155 = arith.select %147, %154, %145 : vector<8x128xi1>, vector<8x128xf32>
    %c8_i32 = arith.constant 8 : i32
    %c0_66 = arith.constant 0 : index
    %c0_67 = arith.constant 0 : index
    %156 = vector.load %arg4[%c0_66, %c0_67] : memref<8x128xf32, #tpu.memory_space<vmem>>, vector<8x128xf32>
    tpu.vector_store %arg4[%c0_66, %c0_67], %155 {strides = array<i32>} : memref<8x128xf32, #tpu.memory_space<vmem>>, vector<8x128xf32>,
    return
  }
  func.func @transform_0(%arg0: i32, %arg1: i32) -> (i32, i32, i32) {
    %c0_i32 = arith.constant 0 : i32
    %c0_i32_0 = arith.constant 0 : i32
    return %arg1, %arg0, %c0_i32 : i32, i32, i32
  }
  func.func @transform_1(%arg0: i32, %arg1: i32) -> (i32, i32, i32) {
    %c0_i32 = arith.constant 0 : i32
    %c0_i32_0 = arith.constant 0 : i32
    return %arg1, %arg0, %c0_i32 : i32, i32, i32
  }
}

</mosaic_0001>

<bundles_post_ra>
// kernel: tpu_custom_call.1
= control target key start
LH: loop header
LB: loop body
LE: loop exit
PB: predicated region body
PF: predicated region fallthrough
CT: control target
= control target key end

     0   :  { %6 = vsyncpa [#allocation4], 0  ;;  %s796_s0 = inlined_call_operand.hbm [shape: f32[8,16,128], index: 0, kind: input, shape index: {}]   ;;  %s797_s1 = inlined_call_operand.hbm [shape: f32[8,16,128], index: 1, kind: output, shape index: {}]  }
   0x1   :  { %8 = vsyncpa [#allocation4 + $0x1], 0 }
   0x2   :  { %9 = vsyncpa [#allocation5], 0 }
   0x3   :  { %11 = vsyncpa [#allocation5 + $0x1], 0  ;;  %s594_s6 = smov 0   ;;  %s596_s7 = smov 0  }
   0x4   :  { %s598_s8 = smov 0   ;;  %s600_s9 = smov 0  }
   0x5   :  { %s602_s10 = smov 0   ;;  %s604_s11 = smov 0  }
   0x6 LB: > { %s357_s12 = sadd.s32 4294967295, %s573_s11   ;;  %s358_s13 = sadd.s32 4294967294, %s573_s11   ;;  %s573_s11 = sphi %s604_s11, %s17_s11   ;;  %s569_s10 = sphi %s602_s10, %s811_s10   ;;  %s565_s9 = sphi %s600_s9, %s810_s9   ;;  %s561_s8 = sphi %s598_s8, %s809_s8   ;;  %s557_s7 = sphi %s596_s7, %s808_s7   ;;  %s553_s6 = sphi %s594_s6, %s807_s6  }
   0x7   : > { %s29_s14 = sadd.s32 1, %s569_s10  ;;  %s38_s15 = sadd.s32 1, %s561_s8 }
   0x8   : > { %p31_p0 = scmp.ge.s32.totalorder %s29_s14, 2  ;;  %p45_p1 = scmp.ne.s32.totalorder %s561_s8, %s557_s7 }
   0x9   : > { %p46_p2 = scmp.eq.s32.totalorder %s573_s11, 0  ;;  %p51_p3 = scmp.ne.s32.totalorder %s557_s7, %s553_s6 }
   0xa   : > { %s813_s14 = smov (%p31_p0, %s29_s14), 0  ;;  %p52_p5 = scmp.eq.s32.totalorder %s357_s12, 0 }
   0xb   : > { %p635_p4 = por %p46_p2, %p45_p1  ;;  %s34_s17 = ssub.s32 %s569_s10, %s813_s14 }
   0xc   : > { %p77_p6 = scmp.eq.s32.totalorder %s357_s12, 1  ;;  %p36_p7 = scmp.eq.s32.totalorder %s34_s17, 0 }
   0xd   : > { %p641_p8 = por %p52_p5, %p51_p3  ;;  %p83_p10 = scmp.eq.s32.totalorder %s358_s13, 1 }
   0xe   : > { %p645_p9 = por %p77_p6, %p45_p1  ;;  %p404_p13 = scmp.lt.s32.totalorder %s573_s11, 2 }
   0xf   : > { %s650_s20 = scalar_select %p36_p7, %s561_s8, %s38_s15  }
  0x10   : > { %s801_s19 = scalar_select %p645_p9, 1, 0 }
  0x11   : > { %p652_p11 = por %p83_p10, %p51_p3  ;;  %s103_s22 = sand.u32 1, %s561_s8  }
  0x12   : > { %s361_s23 = sshll.u32 %s103_s22, 6  ;;  %s362_s24 = sshll.u32 %s569_s10, 7 }
  0x13   : > { %s802_s21 = scalar_select %p652_p11, 1, 0 }
  0x14   : > { %s663_s27 = scalar_lea.hbm %s796_s0, %s362_s24  ;;  %s107_s28 = scalar_lea.vmem [#allocation3], %s361_s23 }
  0x15   : > { %s116_s29 = sshll.u32 %s107_s28, 4  ;;  %p669_p0 = pnand %p404_p13, %p635_p4  ;;  %s665_s29 = int_to_ptr.vmem [resolvable:$true] %s116_s29 }
  0x16   : > { %s673_s2 = scalar_lea.sflag [#allocation4], %s103_s22  ;;  %s461_s3 = scalar_lea.hbm %s663_s27, 1024 }
  0x17   : > { %p462_p1 = scmp.ne.s32.totalorder %s663_s27, %s461_s3  ;;  %p463_p2 = pneg %p669_p0 }
  0x18   : > { %s466_s12 = scalar_lea.hbm %s796_s0, 2048  ;;  %p467_p4 = scmp.lt.u32.totalorder %s663_s27, %s796_s0 }
  0x19   : > { %p464_p3 = pnand %p463_p2, %p462_p1  ;;  %p468_p6 = scmp.lt.u32.totalorder %s466_s12, %s461_s3 }
  0x1a   : > { %p470_p10 = scmp.lt.u32.totalorder %s461_s3, %s663_s27 }
  0x1b   : > { %p465_p5 = pneg %p464_p3  ;;  %p469_p7 = por %p468_p6, %p467_p4 }
  0x1d   : > { %p471_p13 = por %p470_p10, %p469_p7 }
  0x1f   : > { %p472_p12 = pnand %p471_p13, %p465_p5 }
  0x21   : > { %475 = shalt.err (!%p472_p12)
}
  0x22   : > { %s476_s16 = scalar_lea.vmem %s665_s29, 1024  ;;  %s575_s17 = smov [#allocation3]  }
  0x23   : > { %p477_p1 = scmp.ne.s32.totalorder %s665_s29, %s476_s16  ;;  %s481_s22 = sshll.u32 %s575_s17, 4  ;;  %s482_s22 = int_to_ptr.vmem [resolvable:$false] %s481_s22 }
  0x24   : > { %s483_s23 = scalar_lea.vmem %s482_s22, 2048  ;;  %p484_p9 = scmp.lt.s32.totalorder %s665_s29, %s482_s22 }
  0x25   : > { %p479_p3 = pnand %p477_p1, %p463_p2  ;;  %p485_p4 = scmp.lt.s32.totalorder %s483_s23, %s476_s16 }
  0x27   : > { %p480_p11 = pneg %p479_p3  ;;  %p486_p6 = por %p485_p4, %p484_p9 }
  0x29   : > { %p487_p7 = pnand %p486_p6, %p480_p11 }
  0x2b   : > { %490 = shalt.err (!%p487_p7)
}
  0x2c   : > { %s576_s24 = smov 256   ;;  %s577_s25 = smov 128  }
  0x2d   : > { %s578_s26 = smov 8   ;;  %p363_p12 = scmp.ge.s32.totalorder %s573_s11, 1 }
  0x2e   : > { %399 = dma.hbm_to_vmem [thread:$0]  (!%p669_p0), %s663_s27, 1024, %s665_s29, %s673_s2, %s576_s24, %s577_s25, %s578_s26  }
  0x2f   : > { %p124_p2 = scmp.lt.s32.totalorder %s573_s11, 3 }
  0x31   : > { %p125_p5 = pnand %p363_p12, %p124_p2 }
  0x32   : > { %s704_s28 = sand.u32 (!%p125_p5), 1, %s557_s7  }
  0x33   : > { %128 = sbr.rel (%p125_p5) target bundleno = 150 (0x96), region = 24  ;;  %s364_s3 = sshll.u32 (!%p125_p5), %s704_s28, 6 }
  0x34   : > { %s131_s4 = scalar_lea.sflag (!%p125_p5), [#allocation4], %s704_s28  ;;  %s708_s5 = scalar_lea.vmem (!%p125_p5), [#allocation3], %s364_s3 }
  0x3a   : > { %544 = dma.done.wait (%p641_p8), %s131_s4, 1024  }
  0x3b   : > { %546 = vsyncadd (%p641_p8), %s131_s4, 4294966272  ;;  %v161_v0 = vld [vmem:[%s708_s5] sm:$0xff]  ;;  %v579_v2 = vmov 0.0   ;;  %v367_v5 = vld [vmem:[%s708_s5 + $0x8] sm:$0xff]  ;;  %s717_s27 = scalar_lea.vmem [#allocation6], %s364_s3  ;;  %s389_s29 = sshll.u32 %s565_s9, 7 }
  0x3c   : > { %v164_v1 = vmul.f32 0.5, %v161_v0  ;;  %v370_v12 = vld [vmem:[%s708_s5 + $0x10] sm:$0xff]  ;;  %v373_v19 = vld [vmem:[%s708_s5 + $0x18] sm:$0xff]  ;;  %v376_v26 = vld [vmem:[%s708_s5 + $0x20] sm:$0xff]  ;;  %s272_s18 = sshll.u32 %s717_s27, 4  ;;  %s745_s12 = scalar_lea.hbm %s797_s1, %s389_s29  ;;  %s740_s18 = int_to_ptr.vmem [resolvable:$true] %s272_s18 }
  0x3d   : > { %v379_v33 = vld [vmem:[%s708_s5 + $0x28] sm:$0xff]  ;;  %v382_v40 = vld [vmem:[%s708_s5 + $0x30] sm:$0xff]  ;;  %v385_v47 = vld [vmem:[%s708_s5 + $0x38] sm:$0xff]  ;;  %s257_s13 = scalar_lea.sflag [#allocation5], %s704_s28  ;;  %s491_s15 = scalar_lea.vmem %s740_s18, 1024 }
  0x3e   : > { %vm166_vm0 = vcmp.ge.f32.partialorder %v164_v1, 0.5  ;;  %p492_p8 = scmp.ne.s32.totalorder %s740_s18, %s491_s15  ;;  %p804_p9 = scmp.ne.s32.totalorder %s801_s19, 0 }
  0x3f   : > { %v366_v3 = vsel %vm166_vm0, 1.0, %v579_v2  ;;  %v170_v4 = vsel %vm166_vm0, 0.0, %v164_v1  ;;  %s580_s9 = smov [#allocation6]  }
  0x40   : > { %169 = vst [vmem:[%s717_s27] sm:$0xff] %v366_v3  ;;  %v173_v6 = vsub.f32 0.0, %v170_v4  ;;  %p493_p11 = pnand %p492_p8, %p804_p9  ;;  %s495_s16 = sshll.u32 %s580_s9, 4  ;;  %s496_s16 = int_to_ptr.vmem [resolvable:$false] %s495_s16 }
  0x41   : > { %s497_s17 = scalar_lea.vmem %s496_s16, 2048  ;;  %p498_p10 = scmp.lt.s32.totalorder %s740_s18, %s496_s16 }
  0x42   : > { %v174_v7 = vadd.f32 %v367_v5, %v173_v6  ;;  %p494_p0 = pneg %p493_p11  ;;  %p499_p13 = scmp.lt.s32.totalorder %s497_s17, %s491_s15 }
  0x44   : > { %v175_v8 = vmul.f32 0.5, %v174_v7  ;;  %p500_p1 = por %p499_p13, %p498_p10 }
  0x46   : > { %v176_v9 = vadd.f32 %v175_v8, %v170_v4  ;;  %p501_p3 = pnand %p500_p1, %p494_p0 }
  0x48   : > { %vm177_vm1 = vcmp.ge.f32.partialorder %v176_v9, 0.5 }
  0x49   : > { %v368_v10 = vsel %vm177_vm1, 1.0, %v579_v2  ;;  %v182_v11 = vsel %vm177_vm1, 0.0, %v176_v9 }
  0x4a   : > { %369 = vst [vmem:[%s717_s27 + $0x8] sm:$0xff] %v368_v10  ;;  %v185_v13 = vsub.f32 0.0, %v182_v11 }
  0x4c   : > { %v186_v14 = vadd.f32 %v370_v12, %v185_v13 }
  0x4e   : > { %v187_v15 = vmul.f32 0.5, %v186_v14 }
  0x50   : > { %v188_v16 = vadd.f32 %v187_v15, %v182_v11 }
  0x52   : > { %vm189_vm2 = vcmp.ge.f32.partialorder %v188_v16, 0.5 }
  0x53   : > { %v371_v17 = vsel %vm189_vm2, 1.0, %v579_v2  ;;  %v194_v18 = vsel %vm189_vm2, 0.0, %v188_v16 }
  0x54   : > { %372 = vst [vmem:[%s717_s27 + $0x10] sm:$0xff] %v371_v17  ;;  %v197_v20 = vsub.f32 0.0, %v194_v18 }
  0x56   : > { %v198_v21 = vadd.f32 %v373_v19, %v197_v20 }
  0x58   : > { %v199_v22 = vmul.f32 0.5, %v198_v21 }
  0x5a   : > { %v200_v23 = vadd.f32 %v199_v22, %v194_v18 }
  0x5c   : > { %vm201_vm3 = vcmp.ge.f32.partialorder %v200_v23, 0.5 }
  0x5d   : > { %v374_v24 = vsel %vm201_vm3, 1.0, %v579_v2  ;;  %v206_v25 = vsel %vm201_vm3, 0.0, %v200_v23 }
  0x5e   : > { %375 = vst [vmem:[%s717_s27 + $0x18] sm:$0xff] %v374_v24  ;;  %v209_v27 = vsub.f32 0.0, %v206_v25 }
  0x60   : > { %v210_v28 = vadd.f32 %v376_v26, %v209_v27 }
  0x62   : > { %v211_v29 = vmul.f32 0.5, %v210_v28 }
  0x64   : > { %v212_v30 = vadd.f32 %v211_v29, %v206_v25 }
  0x66   : > { %vm213_vm4 = vcmp.ge.f32.partialorder %v212_v30, 0.5 }
  0x67   : > { %v377_v31 = vsel %vm213_vm4, 1.0, %v579_v2  ;;  %v218_v32 = vsel %vm213_vm4, 0.0, %v212_v30 }
  0x68   : > { %378 = vst [vmem:[%s717_s27 + $0x20] sm:$0xff] %v377_v31  ;;  %v221_v34 = vsub.f32 0.0, %v218_v32 }
  0x6a   : > { %v222_v35 = vadd.f32 %v379_v33, %v221_v34 }
  0x6c   : > { %v223_v36 = vmul.f32 0.5, %v222_v35 }
  0x6e   : > { %v224_v37 = vadd.f32 %v223_v36, %v218_v32 }
  0x70   : > { %vm225_vm5 = vcmp.ge.f32.partialorder %v224_v37, 0.5 }
  0x71   : > { %v380_v38 = vsel %vm225_vm5, 1.0, %v579_v2  ;;  %v230_v39 = vsel %vm225_vm5, 0.0, %v224_v37 }
  0x72   : > { %381 = vst [vmem:[%s717_s27 + $0x28] sm:$0xff] %v380_v38  ;;  %v233_v41 = vsub.f32 0.0, %v230_v39 }
  0x74   : > { %v234_v42 = vadd.f32 %v382_v40, %v233_v41 }
  0x76   : > { %v235_v43 = vmul.f32 0.5, %v234_v42 }
  0x78   : > { %v236_v44 = vadd.f32 %v235_v43, %v230_v39 }
  0x7a   : > { %vm237_vm6 = vcmp.ge.f32.partialorder %v236_v44, 0.5 }
  0x7b   : > { %v383_v45 = vsel %vm237_vm6, 1.0, %v579_v2  ;;  %v242_v46 = vsel %vm237_vm6, 0.0, %v236_v44 }
  0x7c   : > { %384 = vst [vmem:[%s717_s27 + $0x30] sm:$0xff] %v383_v45  ;;  %v245_v48 = vsub.f32 0.0, %v242_v46 }
  0x7e   : > { %v246_v49 = vadd.f32 %v385_v47, %v245_v48 }
  0x80   : > { %v247_v50 = vmul.f32 0.5, %v246_v49 }
  0x82   : > { %v248_v51 = vadd.f32 %v247_v50, %v242_v46 }
  0x84   : > { %vm249_vm7 = vcmp.ge.f32.partialorder %v248_v51, 0.5 }
  0x85   : > { %v386_v52 = vsel %vm249_vm7, 1.0, %v579_v2 }
  0x86   : > { %387 = vst [vmem:[%s717_s27 + $0x38] sm:$0xff] %v386_v52 }
  0x87   : > { %504 = shalt.err (!%p501_p3)
}
  0x88   : > { %s505_s22 = scalar_lea.hbm %s745_s12, 1024  ;;  %s509_s25 = scalar_lea.hbm %s797_s1, 2048 }
  0x89   : > { %p506_p4 = scmp.ne.s32.totalorder %s745_s12, %s505_s22  ;;  %p510_p12 = scmp.lt.u32.totalorder %s745_s12, %s797_s1 }
  0x8a   : > { %p511_p2 = scmp.lt.u32.totalorder %s509_s25, %s505_s22  ;;  %p513_p8 = scmp.lt.u32.totalorder %s505_s22, %s745_s12 }
  0x8b   : > { %p507_p6 = pnand %p506_p4, %p804_p9 }
  0x8c   : > { %p512_p5 = por %p511_p2, %p510_p12 }
  0x8d   : > { %p508_p7 = pneg %p507_p6 }
  0x8e   : > { %p514_p11 = por %p513_p8, %p512_p5 }
  0x90   : > { %p515_p0 = pnand %p514_p11, %p508_p7 }
  0x92   : > { %518 = shalt.err (!%p515_p0)
}
  0x93   : > { %s581_s4 = smov 128   ;;  %s582_s5 = smov 256  }
  0x94   : > { %s583_s27 = smov 8  }
  0x95   : > { %394 = dma.vmem_to_hbm [thread:$0]  (%p804_p9), %s740_s18, 1024, %s745_s12, %s257_s13, %s581_s4, %s582_s5, %s583_s27  }
  0x96 PF: > { %s287_s29 = sand.u32 1, %s553_s6   ;;  %p805_p10 = scmp.ne.s32.totalorder %s802_s21, 0 }
  0x97   : > { %p806_p13 = scmp.ge.s32.totalorder %s573_s11, 2  ;;  %s288_s30 = scalar_lea.sflag [#allocation5], %s287_s29 }
  0x99   : > { %p401_p1 = pnand %p806_p13, %p805_p10 }
  0x9b   : > { %548 = dma.done.wait (!%p401_p1), %s288_s30, 1024  }
  0x9c   : > { %550 = vsyncadd (!%p401_p1), %s288_s30, 4294966272  ;;  %s17_s11 = sadd.s32 1, %s573_s11   ;;  %s807_s6 = smov %s557_s7 }
  0x9d   : > { %p14_p3 = scmp.ge.s32.totalorder %s17_s11, 4   ;;  %s808_s7 = smov %s561_s8 }
  0x9e   : > { %s809_s8 = smov %s650_s20  ;;  %s810_s9 = smov %s569_s10 }
  0x9f   : > { %s811_s10 = smov %s813_s14  ;;  %16 = sbr.rel (!%p14_p3) target bundleno = 6 (0x6), region = 87 }
  0xa6   :  { %293 = vsyncpa [#allocation4], 1 }
  0xa7   :  { %295 = vsyncpa [#allocation4 + $0x1], 1 }
  0xa8   :  { %296 = vsyncpa [#allocation5], 1 }
  0xa9   :  { %298 = vsyncpa [#allocation5 + $0x1], 1 }

</bundles_post_ra>
